<compile_context>
chip_gen: v7x
topology: tpu7x:2x2x1
jax: 0.10.0
libtpu: 0.0.40
codegen_flags: <defaults>
</compile_context>

<pallas_src>
import functools

import jax
import jax.numpy as jnp
from jax.experimental import pallas as pl
from jax.experimental.pallas import tpu as pltpu

# ---------------- configuration (small shapes) ----------------
BATCH = 2
SEQ = 8
D_MODEL = 32
NUM_HEADS = 4
D_FF = 64

NEG_INF = 32752.0   # nntrainer.typext.INF (finite fp16-safe constant used as "inf")
LN_EPS = 1e-6       # TODO(synk): norm_cfg not available; assuming COOT default eps=1e-6

# rows of the packed (9, D) f32 small-parameter operand
_BQ, _BK, _BV, _BO, _G1, _BE1, _B2, _G2, _BE2 = range(9)


# ---------------- in-kernel helpers ----------------
def _layernorm_coot(x, gain, bias):
    """COOT layer norm: (x - mean) / (std_unbiased + eps) * gain + bias, over last dim."""
    d = x.shape[-1]
    mean = jnp.mean(x, axis=-1, keepdims=True)
    centered = x - mean
    var = jnp.sum(centered * centered, axis=-1, keepdims=True) / (d - 1)
    std = jnp.sqrt(var)
    return gain * centered / (std + LN_EPS) + bias


def _gelu_exact(x):
    """Exact (erf-based) GELU, matching torch.nn.GELU default."""
    return 0.5 * x * (1.0 + jax.lax.erf(x * 0.7071067811865476))


# ---------------- the Pallas kernel (single invocation, no grid) ----------------
def encoder_layer_kernel(xq_ref, xkv_ref, mfill_ref, wqkvo_ref, w1_ref, w2_ref,
                         pf_ref, b1_ref, out_ref, *, num_heads):
    H = num_heads
    D = xq_ref.shape[-1]
    dh = D // H
    bf16 = jnp.bfloat16

    qa = xq_ref[...]          # (B*Lq, D) f32 -- also the residual for sublayer 1
    ka = xkv_ref[0]           # (B*Lk, D) f32
    va = xkv_ref[1]           # (B*Lk, D) f32

    wq = wqkvo_ref[0]         # (D, D) bf16 (1/sqrt(d_head) already folded in)
    wk = wqkvo_ref[1]
    wv = wqkvo_ref[2]
    wo = wqkvo_ref[3]

    pf = pf_ref[...]          # (9, D) f32 packed small params
    bq = pf[_BQ:_BQ + 1, :]
    bk = pf[_BK:_BK + 1, :]
    bv = pf[_BV:_BV + 1, :]
    bo = pf[_BO:_BO + 1, :]
    g1 = pf[_G1:_G1 + 1, :]
    be1 = pf[_BE1:_BE1 + 1, :]
    b2 = pf[_B2:_B2 + 1, :]
    g2 = pf[_G2:_G2 + 1, :]
    be2 = pf[_BE2:_BE2 + 1, :]

    # --- projections: one lane-dense (rows, D) @ (D, D) MXU op each (f32 accumulation)
    qp = jnp.dot(qa.astype(bf16), wq, preferred_element_type=jnp.float32) + bq
    kp = jnp.dot(ka.astype(bf16), wk, preferred_element_type=jnp.float32) + bk
    vp = jnp.dot(va.astype(bf16), wv, preferred_element_type=jnp.float32) + bv

    # --- head split: (H, rows, dh); batch stays folded into the row (sublane) axis
    def split_heads(x):
        return jnp.stack([x[:, h * dh:(h + 1) * dh] for h in range(H)], axis=0)

    qh = split_heads(qp).astype(bf16)        # (H, B*Lq, dh)
    kh = split_heads(kp).astype(bf16)        # (H, B*Lk, dh)
    vh = split_heads(vp).astype(bf16)

    # --- all-batch all-head scores in one head-batched matmul: (H, B*Lq, B*Lk)
    s = jnp.einsum('hqd,hkd->hqk', qh, kh, preferred_element_type=jnp.float32)

    # masked_fill semantics: fill < -1 marks masked entries; the fill VALUE is used
    # directly (-NEG_INF for source-masked, -2*NEG_INF for cross-batch pairs, whose
    # exp underflows to exactly 0 so cross-batch keys never contribute).
    fill = mfill_ref[...]                                        # (B*Lq, B*Lk) f32
    cond = fill < -1.0
    s = jnp.where(jnp.broadcast_to(cond[None], s.shape),
                  jnp.broadcast_to(fill[None], s.shape), s)

    m = jnp.max(s, axis=-1, keepdims=True)
    e = jnp.exp(s - m)
    attn = e * pl.reciprocal(jnp.sum(e, axis=-1, keepdims=True), approx=True)

    ctx = jnp.einsum('hqk,hkd->hqd', attn.astype(bf16), vh,
                     preferred_element_type=jnp.float32)         # (H, B*Lq, dh)

    # --- concat heads along lanes + ONE (D, D) output projection (no per-head sum)
    ctx_cat = jnp.concatenate([ctx[h] for h in range(H)], axis=-1)   # (B*Lq, D)
    attn_out = jnp.dot(ctx_cat.astype(bf16), wo,
                       preferred_element_type=jnp.float32) + bo

    # --- sublayer 1: residual (with query) + COOT layer norm (f32)
    x1 = _layernorm_coot(attn_out + qa, g1, be1)

    # dropout(p=0) -> identity

    # --- pointwise feed-forward (bf16 matmul operands, f32 accumulation & elementwise)
    h1 = jnp.dot(x1.astype(bf16), w1_ref[...],
                 preferred_element_type=jnp.float32) + b1_ref[...]
    h1 = _gelu_exact(h1)        # exact erf GELU for torch parity (tanh-EUP variant optional)
    ff = jnp.dot(h1.astype(bf16), w2_ref[...],
                 preferred_element_type=jnp.float32) + b2

    # --- sublayer 2: residual + COOT layer norm
    out_ref[...] = _layernorm_coot(ff + x1, g2, be2)


# ---------------- wrapper ----------------
def transformer_encoder_layer(q, k, v, mask, params, *, num_heads):
    B, Lq, D = q.shape
    Lk = k.shape[1]
    dh = D // num_heads
    dff = params["w1"].shape[1]
    scale = 1.0 / (dh ** 0.5)
    bf16 = jnp.bfloat16

    # inputs: q separate (also the residual); k and v stacked into one operand
    xq = q.reshape(B * Lq, D).astype(jnp.float32)
    xkv = jnp.stack([k.reshape(B * Lk, D), v.reshape(B * Lk, D)]).astype(jnp.float32)

    # precomputed "fill" mask over the batch-folded score matrix (B*Lq, B*Lk):
    #   0                 -> visible (same batch, not source-masked)
    #   -NEG_INF          -> source-masked (exact masked_fill replace value)
    #   -2*NEG_INF        -> cross-batch pair (exp underflows to 0)
    mask_fill = jnp.full((B * Lq, B * Lk), -2.0 * NEG_INF, jnp.float32)
    for b in range(B):
        blk = jnp.where(mask[b] > 0.5, -NEG_INF, 0.0).astype(jnp.float32)
        mask_fill = mask_fill.at[b * Lq:(b + 1) * Lq, b * Lk:(b + 1) * Lk].set(blk)

    # packed weights: (4, D, D) bf16 -- Wq (pre-scaled), Wk, Wv, Wo
    wqkvo = jnp.stack([params["wq"] * scale, params["wk"],
                       params["wv"], params["wo"]]).astype(bf16)

    # packed width-D f32 params: biases + LN gains/betas, one (9, D) buffer
    pf = jnp.concatenate([
        params["bq"] * scale, params["bk"], params["bv"], params["bo"],
        params["g1"], params["be1"], params["b2"], params["g2"], params["be2"],
    ], axis=0).astype(jnp.float32)

    operands = (
        xq,                                    # (B*Lq, D) f32
        xkv,                                   # (2, B*Lk, D) f32
        mask_fill,                             # (B*Lq, B*Lk) f32
        wqkvo,                                 # (4, D, D) bf16
        params["w1"].astype(bf16),             # (D, Dff) bf16
        params["w2"].astype(bf16),             # (Dff, D) bf16
        pf,                                    # (9, D) f32
        params["b1"].astype(jnp.float32),      # (1, Dff) f32
    )

    # advisory cost estimate so XLA schedules/overlaps the tiny custom call sensibly
    flops = int(2 * D * D * (B * Lq + 2 * B * Lk)                     # QKV projections
                + 4 * num_heads * (B * Lq) * (B * Lk) * dh            # scores + ctx
                + 2 * (B * Lq) * D * D                                # output projection
                + 4 * (B * Lq) * D * dff)                             # FFN matmuls
    transcendentals = int(num_heads * (B * Lq) * (B * Lk) + (B * Lq) * dff)
    bytes_accessed = int(sum(o.size * o.dtype.itemsize for o in operands)
                         + (B * Lq) * D * 4)
    cost = pl.CostEstimate(flops=flops, transcendentals=transcendentals,
                           bytes_accessed=bytes_accessed)

    kernel = functools.partial(encoder_layer_kernel, num_heads=num_heads)

    out_flat = pl.pallas_call(
        kernel,
        out_shape=jax.ShapeDtypeStruct((B * Lq, D), jnp.float32),
        in_specs=[pl.BlockSpec(memory_space=pltpu.MemorySpace.VMEM) for _ in operands],
        out_specs=pl.BlockSpec(memory_space=pltpu.MemorySpace.VMEM),
        cost_estimate=cost,
    )(*operands)
    return out_flat.reshape(B, Lq, D)


# ---------------- pure-JAX f32 reference (same math, for validation) ----------------
def reference_encoder_layer(q, k, v, mask, params, *, num_heads):
    B, L, D = q.shape
    dh = D // num_heads

    def proj(x, w, b):
        return x @ w + b

    qp = proj(q, params["wq"], params["bq"])
    kp = proj(k, params["wk"], params["bk"])
    vp = proj(v, params["wv"], params["bv"])

    def heads(x):
        return x.reshape(B, L, num_heads, dh).transpose(0, 2, 1, 3)  # (B,H,L,dh)

    qh, kh, vh = heads(qp), heads(kp), heads(vp)
    scores = jnp.einsum("bhqd,bhkd->bhqk", qh, kh) / jnp.sqrt(jnp.float32(dh))
    scores = jnp.where(mask[:, None, :, :] > 0.5, -NEG_INF, scores)
    attn = jax.nn.softmax(scores, axis=-1)
    ctx = jnp.einsum("bhqk,bhkd->bhqd", attn, vh).transpose(0, 2, 1, 3).reshape(B, L, D)
    attn_out = proj(ctx, params["wo"], params["bo"])

    def ln(x, g, b):
        mean = jnp.mean(x, axis=-1, keepdims=True)
        c = x - mean
        std = jnp.sqrt(jnp.sum(c * c, axis=-1, keepdims=True) / (x.shape[-1] - 1))
        return g * c / (std + LN_EPS) + b

    x1 = ln(attn_out + q, params["g1"], params["be1"])
    h1 = proj(x1, params["w1"], params["b1"])
    h1 = 0.5 * h1 * (1.0 + jax.lax.erf(h1 * 0.7071067811865476))
    ff = proj(h1, params["w2"], params["b2"])
    return ln(ff + x1, params["g2"], params["be2"])


# ---------------- main ----------------
if __name__ == "__main__":
    key = jax.random.PRNGKey(0)
    keys = jax.random.split(key, 16)

    B, L, D, H, Dff = BATCH, SEQ, D_MODEL, NUM_HEADS, D_FF

    # deterministic synthetic parameters (shapes from the module's __init__), y = x @ W + b
    params = {
        "wq": 0.1 * jax.random.normal(keys[0], (D, D), jnp.float32),
        "bq": 0.01 * jax.random.normal(keys[1], (1, D), jnp.float32),
        "wk": 0.1 * jax.random.normal(keys[2], (D, D), jnp.float32),
        "bk": 0.01 * jax.random.normal(keys[3], (1, D), jnp.float32),
        "wv": 0.1 * jax.random.normal(keys[4], (D, D), jnp.float32),
        "bv": 0.01 * jax.random.normal(keys[5], (1, D), jnp.float32),
        "wo": 0.1 * jax.random.normal(keys[6], (D, D), jnp.float32),
        "bo": 0.01 * jax.random.normal(keys[7], (1, D), jnp.float32),
        "g1": jnp.ones((1, D), jnp.float32),
        "be1": jnp.zeros((1, D), jnp.float32),
        "w1": 0.1 * jax.random.normal(keys[8], (D, Dff), jnp.float32),
        "b1": 0.01 * jax.random.normal(keys[9], (1, Dff), jnp.float32),
        "w2": 0.1 * jax.random.normal(keys[10], (Dff, D), jnp.float32),
        "b2": 0.01 * jax.random.normal(keys[11], (1, D), jnp.float32),
        "g2": jnp.ones((1, D), jnp.float32),
        "be2": jnp.zeros((1, D), jnp.float32),
    }

    # self-attention: query = key = value (as in the BERT-style encoder)
    x = jax.random.normal(keys[12], (B, L, D), jnp.float32)
    q = k = v = x

    # sources_mask: 1.0 = masked.  Batch 0 fully visible; batch 1 masks last 2 keys.
    key_invalid = jnp.array([[0] * L, [0] * (L - 2) + [1] * 2], jnp.float32)  # (B, Lk)
    sources_mask = jnp.broadcast_to(key_invalid[:, None, :], (B, L, L)).astype(jnp.float32)

    out = transformer_encoder_layer(q, k, v, sources_mask, params, num_heads=H)
    out = jax.block_until_ready(out)

    ref = reference_encoder_layer(q, k, v, sources_mask, params, num_heads=H)
    ref = jax.block_until_ready(ref)

    assert out.shape == (B, L, D), out.shape
    # bf16 MXU operands (f32 accumulation) vs the f32 reference: expected max deviation ~2e-3.
    assert jnp.allclose(out, ref, rtol=1e-2, atol=1e-2), (
        "max abs diff = " + str(float(jnp.max(jnp.abs(out - ref)))))

    print("KERNEL_OK")
</pallas_src>

<mosaic_0001>
module attributes {stable_mosaic.version = 11 : i64} {
  func.func @encoder_layer_kernel(%arg0: memref<16x32xf32, #tpu.memory_space<vmem>>, %arg1: memref<2x16x32xf32, #tpu.memory_space<vmem>>, %arg2: memref<16x16xf32, #tpu.memory_space<vmem>>, %arg3: memref<4x32x32xbf16, #tpu.memory_space<vmem>>, %arg4: memref<32x64xbf16, #tpu.memory_space<vmem>>, %arg5: memref<64x32xbf16, #tpu.memory_space<vmem>>, %arg6: memref<9x32xf32, #tpu.memory_space<vmem>>, %arg7: memref<1x64xf32, #tpu.memory_space<vmem>>, %arg8: memref<16x32xf32, #tpu.memory_space<vmem>>) attributes {dimension_semantics = [], scalar_prefetch = 0 : i64, scratch_operands = 0 : i64, tpu.core_type = #tpu.core_type<tc>} {
    %c0 = arith.constant 0 : index
    %c0_0 = arith.constant 0 : index
    %0 = vector.load %arg0[%c0, %c0_0] : memref<16x32xf32, #tpu.memory_space<vmem>>, vector<16x32xf32>
    %c0_1 = arith.constant 0 : index
    %c0_2 = arith.constant 0 : index
    %c0_3 = arith.constant 0 : index
    %1 = vector.load %arg1[%c0_1, %c0_2, %c0_3] : memref<2x16x32xf32, #tpu.memory_space<vmem>>, vector<1x16x32xf32>
    %2 = vector.shape_cast %1 : vector<1x16x32xf32> to vector<16x32xf32>
    %c1 = arith.constant 1 : index
    %c0_4 = arith.constant 0 : index
    %c0_5 = arith.constant 0 : index
    %3 = vector.load %arg1[%c1, %c0_4, %c0_5] : memref<2x16x32xf32, #tpu.memory_space<vmem>>, vector<1x16x32xf32>
    %4 = vector.shape_cast %3 : vector<1x16x32xf32> to vector<16x32xf32>
    %c0_6 = arith.constant 0 : index
    %c0_7 = arith.constant 0 : index
    %c0_8 = arith.constant 0 : index
    %5 = vector.load %arg3[%c0_6, %c0_7, %c0_8] : memref<4x32x32xbf16, #tpu.memory_space<vmem>>, vector<1x32x32xbf16>
    %6 = vector.shape_cast %5 : vector<1x32x32xbf16> to vector<32x32xbf16>
    %c1_9 = arith.constant 1 : index
    %c0_10 = arith.constant 0 : index
    %c0_11 = arith.constant 0 : index
    %7 = vector.load %arg3[%c1_9, %c0_10, %c0_11] : memref<4x32x32xbf16, #tpu.memory_space<vmem>>, vector<1x32x32xbf16>
    %8 = vector.shape_cast %7 : vector<1x32x32xbf16> to vector<32x32xbf16>
    %c2 = arith.constant 2 : index
    %c0_12 = arith.constant 0 : index
    %c0_13 = arith.constant 0 : index
    %9 = vector.load %arg3[%c2, %c0_12, %c0_13] : memref<4x32x32xbf16, #tpu.memory_space<vmem>>, vector<1x32x32xbf16>
    %10 = vector.shape_cast %9 : vector<1x32x32xbf16> to vector<32x32xbf16>
    %c3 = arith.constant 3 : index
    %c0_14 = arith.constant 0 : index
    %c0_15 = arith.constant 0 : index
    %11 = vector.load %arg3[%c3, %c0_14, %c0_15] : memref<4x32x32xbf16, #tpu.memory_space<vmem>>, vector<1x32x32xbf16>
    %12 = vector.shape_cast %11 : vector<1x32x32xbf16> to vector<32x32xbf16>
    %c0_16 = arith.constant 0 : index
    %c0_17 = arith.constant 0 : index
    %13 = vector.load %arg6[%c0_16, %c0_17] : memref<9x32xf32, #tpu.memory_space<vmem>>, vector<9x32xf32>
    %14 = vector.extract_strided_slice %13 {offsets = [0, 0], sizes = [1, 32], strides = [1, 1]} : vector<9x32xf32> to vector<1x32xf32>
    %15 = vector.extract_strided_slice %13 {offsets = [1, 0], sizes = [1, 32], strides = [1, 1]} : vector<9x32xf32> to vector<1x32xf32>
    %16 = vector.extract_strided_slice %13 {offsets = [2, 0], sizes = [1, 32], strides = [1, 1]} : vector<9x32xf32> to vector<1x32xf32>
    %17 = vector.extract_strided_slice %13 {offsets = [3, 0], sizes = [1, 32], strides = [1, 1]} : vector<9x32xf32> to vector<1x32xf32>
    %18 = vector.extract_strided_slice %13 {offsets = [4, 0], sizes = [1, 32], strides = [1, 1]} : vector<9x32xf32> to vector<1x32xf32>
    %19 = vector.extract_strided_slice %13 {offsets = [5, 0], sizes = [1, 32], strides = [1, 1]} : vector<9x32xf32> to vector<1x32xf32>
    %20 = vector.extract_strided_slice %13 {offsets = [6, 0], sizes = [1, 32], strides = [1, 1]} : vector<9x32xf32> to vector<1x32xf32>
    %21 = vector.extract_strided_slice %13 {offsets = [7, 0], sizes = [1, 32], strides = [1, 1]} : vector<9x32xf32> to vector<1x32xf32>
    %22 = vector.extract_strided_slice %13 {offsets = [8, 0], sizes = [1, 32], strides = [1, 1]} : vector<9x32xf32> to vector<1x32xf32>
    %23 = arith.truncf %0 : vector<16x32xf32> to vector<16x32xbf16>
    %cst = arith.constant dense<0.000000e+00> : vector<16x32xf32>
    %24 = tpu.matmul %23, %6, %cst {dimension_numbers = #tpu.dot_dimension_numbers<[1], [0], [0], [1], [0, 0, 1, 1], [], []>} : vector<16x32xbf16>, vector<32x32xbf16>, vector<16x32xf32> -> vector<16x32xf32>
    %25 = vector.broadcast %14 : vector<1x32xf32> to vector<16x32xf32>
    %26 = arith.addf %24, %25 : vector<16x32xf32>
    %27 = arith.truncf %2 : vector<16x32xf32> to vector<16x32xbf16>
    %cst_18 = arith.constant dense<0.000000e+00> : vector<16x32xf32>
    %28 = tpu.matmul %27, %8, %cst_18 {dimension_numbers = #tpu.dot_dimension_numbers<[1], [0], [0], [1], [0, 0, 1, 1], [], []>} : vector<16x32xbf16>, vector<32x32xbf16>, vector<16x32xf32> -> vector<16x32xf32>
    %29 = vector.broadcast %15 : vector<1x32xf32> to vector<16x32xf32>
    %30 = arith.addf %28, %29 : vector<16x32xf32>
    %31 = arith.truncf %4 : vector<16x32xf32> to vector<16x32xbf16>
    %cst_19 = arith.constant dense<0.000000e+00> : vector<16x32xf32>
    %32 = tpu.matmul %31, %10, %cst_19 {dimension_numbers = #tpu.dot_dimension_numbers<[1], [0], [0], [1], [0, 0, 1, 1], [], []>} : vector<16x32xbf16>, vector<32x32xbf16>, vector<16x32xf32> -> vector<16x32xf32>
    %33 = vector.broadcast %16 : vector<1x32xf32> to vector<16x32xf32>
    %34 = arith.addf %32, %33 : vector<16x32xf32>
    %35 = vector.extract_strided_slice %26 {offsets = [0, 0], sizes = [16, 8], strides = [1, 1]} : vector<16x32xf32> to vector<16x8xf32>
    %36 = vector.extract_strided_slice %26 {offsets = [0, 8], sizes = [16, 8], strides = [1, 1]} : vector<16x32xf32> to vector<16x8xf32>
    %37 = vector.extract_strided_slice %26 {offsets = [0, 16], sizes = [16, 8], strides = [1, 1]} : vector<16x32xf32> to vector<16x8xf32>
    %38 = vector.extract_strided_slice %26 {offsets = [0, 24], sizes = [16, 8], strides = [1, 1]} : vector<16x32xf32> to vector<16x8xf32>
    %39 = vector.shape_cast %35 : vector<16x8xf32> to vector<1x16x8xf32>
    %40 = vector.shape_cast %36 : vector<16x8xf32> to vector<1x16x8xf32>
    %41 = vector.shape_cast %37 : vector<16x8xf32> to vector<1x16x8xf32>
    %42 = vector.shape_cast %38 : vector<16x8xf32> to vector<1x16x8xf32>
    %43 = tpu.concatenate %39, %40, %41, %42 in 0 : vector<1x16x8xf32>, vector<1x16x8xf32>, vector<1x16x8xf32>, vector<1x16x8xf32> -> vector<4x16x8xf32>
    %44 = arith.truncf %43 : vector<4x16x8xf32> to vector<4x16x8xbf16>
    %45 = vector.extract_strided_slice %30 {offsets = [0, 0], sizes = [16, 8], strides = [1, 1]} : vector<16x32xf32> to vector<16x8xf32>
    %46 = vector.extract_strided_slice %30 {offsets = [0, 8], sizes = [16, 8], strides = [1, 1]} : vector<16x32xf32> to vector<16x8xf32>
    %47 = vector.extract_strided_slice %30 {offsets = [0, 16], sizes = [16, 8], strides = [1, 1]} : vector<16x32xf32> to vector<16x8xf32>
    %48 = vector.extract_strided_slice %30 {offsets = [0, 24], sizes = [16, 8], strides = [1, 1]} : vector<16x32xf32> to vector<16x8xf32>
    %49 = vector.shape_cast %45 : vector<16x8xf32> to vector<1x16x8xf32>
    %50 = vector.shape_cast %46 : vector<16x8xf32> to vector<1x16x8xf32>
    %51 = vector.shape_cast %47 : vector<16x8xf32> to vector<1x16x8xf32>
    %52 = vector.shape_cast %48 : vector<16x8xf32> to vector<1x16x8xf32>
    %53 = tpu.concatenate %49, %50, %51, %52 in 0 : vector<1x16x8xf32>, vector<1x16x8xf32>, vector<1x16x8xf32>, vector<1x16x8xf32> -> vector<4x16x8xf32>
    %54 = arith.truncf %53 : vector<4x16x8xf32> to vector<4x16x8xbf16>
    %55 = vector.extract_strided_slice %34 {offsets = [0, 0], sizes = [16, 8], strides = [1, 1]} : vector<16x32xf32> to vector<16x8xf32>
    %56 = vector.extract_strided_slice %34 {offsets = [0, 8], sizes = [16, 8], strides = [1, 1]} : vector<16x32xf32> to vector<16x8xf32>
    %57 = vector.extract_strided_slice %34 {offsets = [0, 16], sizes = [16, 8], strides = [1, 1]} : vector<16x32xf32> to vector<16x8xf32>
    %58 = vector.extract_strided_slice %34 {offsets = [0, 24], sizes = [16, 8], strides = [1, 1]} : vector<16x32xf32> to vector<16x8xf32>
    %59 = vector.shape_cast %55 : vector<16x8xf32> to vector<1x16x8xf32>
    %60 = vector.shape_cast %56 : vector<16x8xf32> to vector<1x16x8xf32>
    %61 = vector.shape_cast %57 : vector<16x8xf32> to vector<1x16x8xf32>
    %62 = vector.shape_cast %58 : vector<16x8xf32> to vector<1x16x8xf32>
    %63 = tpu.concatenate %59, %60, %61, %62 in 0 : vector<1x16x8xf32>, vector<1x16x8xf32>, vector<1x16x8xf32>, vector<1x16x8xf32> -> vector<4x16x8xf32>
    %64 = arith.truncf %63 : vector<4x16x8xf32> to vector<4x16x8xbf16>
    "tpu.trace_start"() <{level = 10 : i32, message = "hqd,hkd->hqk"}> : () -> ()
    %cst_20 = arith.constant dense<0.000000e+00> : vector<4x16x16xf32>
    %65 = tpu.matmul %44, %54, %cst_20 {dimension_numbers = #tpu.dot_dimension_numbers<[2], [2], [1], [1], [0, 0, 0, 1, 1, 1], [0], [0]>} : vector<4x16x8xbf16>, vector<4x16x8xbf16>, vector<4x16x16xf32> -> vector<4x16x16xf32>
    "tpu.trace_stop"() : () -> ()
    %c0_21 = arith.constant 0 : index
    %c0_22 = arith.constant 0 : index
    %66 = vector.load %arg2[%c0_21, %c0_22] : memref<16x16xf32, #tpu.memory_space<vmem>>, vector<16x16xf32>
    %cst_23 = arith.constant -1.000000e+00 : f32
    %67 = vector.broadcast %cst_23 : f32 to vector<16x16xf32>
    %68 = arith.cmpf olt, %66, %67 : vector<16x16xf32>
    %69 = vector.shape_cast %68 : vector<16x16xi1> to vector<1x16x16xi1>
    %70 = vector.shape_cast %69 : vector<1x16x16xi1> to vector<1x16x16xi1>
    %71 = vector.broadcast %70 : vector<1x16x16xi1> to vector<4x16x16xi1>
    %72 = vector.shape_cast %66 : vector<16x16xf32> to vector<1x16x16xf32>
    %73 = vector.shape_cast %72 : vector<1x16x16xf32> to vector<1x16x16xf32>
    %74 = vector.broadcast %73 : vector<1x16x16xf32> to vector<4x16x16xf32>
    %75 = arith.select %71, %74, %65 : vector<4x16x16xi1>, vector<4x16x16xf32>
    %cst_24 = arith.constant dense<0xFF800000> : vector<4x16xf32>
    %76 = vector.multi_reduction <maximumf>, %75, %cst_24 [2] : vector<4x16x16xf32> to vector<4x16xf32>
    %77 = vector.shape_cast %76 : vector<4x16xf32> to vector<4x16x1xf32>
    %78 = vector.broadcast %77 : vector<4x16x1xf32> to vector<4x16x16xf32>
    %79 = arith.subf %75, %78 : vector<4x16x16xf32>
    %80 = math.exp %79 : vector<4x16x16xf32>
    %cst_25 = arith.constant dense<0.000000e+00> : vector<4x16xf32>
    %81 = vector.multi_reduction <add>, %80, %cst_25 [2] : vector<4x16x16xf32> to vector<4x16xf32>
    %82 = vector.shape_cast %81 : vector<4x16xf32> to vector<4x16x1xf32>
    %83 = tpu.reciprocal %82 {approx = true} : vector<4x16x1xf32> -> vector<4x16x1xf32>
    %84 = vector.broadcast %83 : vector<4x16x1xf32> to vector<4x16x16xf32>
    %85 = arith.mulf %80, %84 : vector<4x16x16xf32>
    %86 = arith.truncf %85 : vector<4x16x16xf32> to vector<4x16x16xbf16>
    "tpu.trace_start"() <{level = 10 : i32, message = "hqk,hkd->hqd"}> : () -> ()
    %cst_26 = arith.constant dense<0.000000e+00> : vector<4x16x8xf32>
    %87 = tpu.matmul %86, %64, %cst_26 {dimension_numbers = #tpu.dot_dimension_numbers<[2], [1], [1], [2], [0, 0, 0, 1, 1, 2], [0], [0]>} : vector<4x16x16xbf16>, vector<4x16x8xbf16>, vector<4x16x8xf32> -> vector<4x16x8xf32>
    "tpu.trace_stop"() : () -> ()
    %88 = vector.extract_strided_slice %87 {offsets = [0, 0, 0], sizes = [1, 16, 8], strides = [1, 1, 1]} : vector<4x16x8xf32> to vector<1x16x8xf32>
    %89 = vector.shape_cast %88 : vector<1x16x8xf32> to vector<16x8xf32>
    %90 = vector.extract_strided_slice %87 {offsets = [1, 0, 0], sizes = [1, 16, 8], strides = [1, 1, 1]} : vector<4x16x8xf32> to vector<1x16x8xf32>
    %91 = vector.shape_cast %90 : vector<1x16x8xf32> to vector<16x8xf32>
    %92 = vector.extract_strided_slice %87 {offsets = [2, 0, 0], sizes = [1, 16, 8], strides = [1, 1, 1]} : vector<4x16x8xf32> to vector<1x16x8xf32>
    %93 = vector.shape_cast %92 : vector<1x16x8xf32> to vector<16x8xf32>
    %94 = vector.extract_strided_slice %87 {offsets = [3, 0, 0], sizes = [1, 16, 8], strides = [1, 1, 1]} : vector<4x16x8xf32> to vector<1x16x8xf32>
    %95 = vector.shape_cast %94 : vector<1x16x8xf32> to vector<16x8xf32>
    %96 = tpu.concatenate %89, %91, %93, %95 in 1 : vector<16x8xf32>, vector<16x8xf32>, vector<16x8xf32>, vector<16x8xf32> -> vector<16x32xf32>
    %97 = arith.truncf %96 : vector<16x32xf32> to vector<16x32xbf16>
    %cst_27 = arith.constant dense<0.000000e+00> : vector<16x32xf32>
    %98 = tpu.matmul %97, %12, %cst_27 {dimension_numbers = #tpu.dot_dimension_numbers<[1], [0], [0], [1], [0, 0, 1, 1], [], []>} : vector<16x32xbf16>, vector<32x32xbf16>, vector<16x32xf32> -> vector<16x32xf32>
    %99 = vector.broadcast %17 : vector<1x32xf32> to vector<16x32xf32>
    %100 = arith.addf %98, %99 : vector<16x32xf32>
    %101 = arith.addf %100, %0 : vector<16x32xf32>
    %cst_28 = arith.constant dense<0.000000e+00> : vector<16xf32>
    %102 = vector.multi_reduction <add>, %101, %cst_28 [1] : vector<16x32xf32> to vector<16xf32>
    %103 = vector.shape_cast %102 : vector<16xf32> to vector<16x1xf32>
    %cst_29 = arith.constant 3.200000e+01 : f32
    %104 = vector.broadcast %cst_29 : f32 to vector<16x1xf32>
    %105 = arith.divf %103, %104 : vector<16x1xf32>
    %106 = vector.broadcast %105 : vector<16x1xf32> to vector<16x32xf32>
    %107 = arith.subf %101, %106 : vector<16x32xf32>
    %108 = arith.mulf %107, %107 : vector<16x32xf32>
    %cst_30 = arith.constant dense<0.000000e+00> : vector<16xf32>
    %109 = vector.multi_reduction <add>, %108, %cst_30 [1] : vector<16x32xf32> to vector<16xf32>
    %110 = vector.shape_cast %109 : vector<16xf32> to vector<16x1xf32>
    %cst_31 = arith.constant 3.100000e+01 : f32
    %111 = vector.broadcast %cst_31 : f32 to vector<16x1xf32>
    %112 = arith.divf %110, %111 : vector<16x1xf32>
    %113 = math.sqrt %112 : vector<16x1xf32>
    %114 = vector.broadcast %18 : vector<1x32xf32> to vector<16x32xf32>
    %115 = arith.mulf %114, %107 : vector<16x32xf32>
    %cst_32 = arith.constant 9.99999997E-7 : f32
    %116 = vector.broadcast %cst_32 : f32 to vector<16x1xf32>
    %117 = arith.addf %113, %116 : vector<16x1xf32>
    %118 = vector.broadcast %117 : vector<16x1xf32> to vector<16x32xf32>
    %119 = arith.divf %115, %118 : vector<16x32xf32>
    %120 = vector.broadcast %19 : vector<1x32xf32> to vector<16x32xf32>
    %121 = arith.addf %119, %120 : vector<16x32xf32>
    %122 = arith.truncf %121 : vector<16x32xf32> to vector<16x32xbf16>
    %c0_33 = arith.constant 0 : index
    %c0_34 = arith.constant 0 : index
    %123 = vector.load %arg4[%c0_33, %c0_34] : memref<32x64xbf16, #tpu.memory_space<vmem>>, vector<32x64xbf16>
    %cst_35 = arith.constant dense<0.000000e+00> : vector<16x64xf32>
    %124 = tpu.matmul %122, %123, %cst_35 {dimension_numbers = #tpu.dot_dimension_numbers<[1], [0], [0], [1], [0, 0, 1, 1], [], []>} : vector<16x32xbf16>, vector<32x64xbf16>, vector<16x64xf32> -> vector<16x64xf32>
    %c0_36 = arith.constant 0 : index
    %c0_37 = arith.constant 0 : index
    %125 = vector.load %arg7[%c0_36, %c0_37] : memref<1x64xf32, #tpu.memory_space<vmem>>, vector<1x64xf32>
    %126 = vector.broadcast %125 : vector<1x64xf32> to vector<16x64xf32>
    %127 = arith.addf %124, %126 : vector<16x64xf32>
    %cst_38 = arith.constant 5.000000e-01 : f32
    %128 = vector.broadcast %cst_38 : f32 to vector<16x64xf32>
    %129 = arith.mulf %128, %127 : vector<16x64xf32>
    %cst_39 = arith.constant 0.707106769 : f32
    %130 = vector.broadcast %cst_39 : f32 to vector<16x64xf32>
    %131 = arith.mulf %127, %130 : vector<16x64xf32>
    %132 = math.erf %131 : vector<16x64xf32>
    %cst_40 = arith.constant 1.000000e+00 : f32
    %133 = vector.broadcast %cst_40 : f32 to vector<16x64xf32>
    %134 = arith.addf %133, %132 : vector<16x64xf32>
    %135 = arith.mulf %129, %134 : vector<16x64xf32>
    %136 = arith.truncf %135 : vector<16x64xf32> to vector<16x64xbf16>
    %c0_41 = arith.constant 0 : index
    %c0_42 = arith.constant 0 : index
    %137 = vector.load %arg5[%c0_41, %c0_42] : memref<64x32xbf16, #tpu.memory_space<vmem>>, vector<64x32xbf16>
    %cst_43 = arith.constant dense<0.000000e+00> : vector<16x32xf32>
    %138 = tpu.matmul %136, %137, %cst_43 {dimension_numbers = #tpu.dot_dimension_numbers<[1], [0], [0], [1], [0, 0, 1, 1], [], []>} : vector<16x64xbf16>, vector<64x32xbf16>, vector<16x32xf32> -> vector<16x32xf32>
    %139 = vector.broadcast %20 : vector<1x32xf32> to vector<16x32xf32>
    %140 = arith.addf %138, %139 : vector<16x32xf32>
    %141 = arith.addf %140, %121 : vector<16x32xf32>
    %cst_44 = arith.constant dense<0.000000e+00> : vector<16xf32>
    %142 = vector.multi_reduction <add>, %141, %cst_44 [1] : vector<16x32xf32> to vector<16xf32>
    %143 = vector.shape_cast %142 : vector<16xf32> to vector<16x1xf32>
    %cst_45 = arith.constant 3.200000e+01 : f32
    %144 = vector.broadcast %cst_45 : f32 to vector<16x1xf32>
    %145 = arith.divf %143, %144 : vector<16x1xf32>
    %146 = vector.broadcast %145 : vector<16x1xf32> to vector<16x32xf32>
    %147 = arith.subf %141, %146 : vector<16x32xf32>
    %148 = arith.mulf %147, %147 : vector<16x32xf32>
    %cst_46 = arith.constant dense<0.000000e+00> : vector<16xf32>
    %149 = vector.multi_reduction <add>, %148, %cst_46 [1] : vector<16x32xf32> to vector<16xf32>
    %150 = vector.shape_cast %149 : vector<16xf32> to vector<16x1xf32>
    %cst_47 = arith.constant 3.100000e+01 : f32
    %151 = vector.broadcast %cst_47 : f32 to vector<16x1xf32>
    %152 = arith.divf %150, %151 : vector<16x1xf32>
    %153 = math.sqrt %152 : vector<16x1xf32>
    %154 = vector.broadcast %21 : vector<1x32xf32> to vector<16x32xf32>
    %155 = arith.mulf %154, %147 : vector<16x32xf32>
    %cst_48 = arith.constant 9.99999997E-7 : f32
    %156 = vector.broadcast %cst_48 : f32 to vector<16x1xf32>
    %157 = arith.addf %153, %156 : vector<16x1xf32>
    %158 = vector.broadcast %157 : vector<16x1xf32> to vector<16x32xf32>
    %159 = arith.divf %155, %158 : vector<16x32xf32>
    %160 = vector.broadcast %22 : vector<1x32xf32> to vector<16x32xf32>
    %161 = arith.addf %159, %160 : vector<16x32xf32>
    %c0_49 = arith.constant 0 : index
    %c0_50 = arith.constant 0 : index
    %162 = vector.load %arg8[%c0_49, %c0_50] : memref<16x32xf32, #tpu.memory_space<vmem>>, vector<16x32xf32>
    tpu.vector_store %arg8[%c0_49, %c0_50], %161 {strides = array<i32>} : memref<16x32xf32, #tpu.memory_space<vmem>>, vector<16x32xf32>,
    return
  }
}

</mosaic_0001>

<bundles_post_ra>
// kernel: tpu_custom_call.1
= control target key start
LH: loop header
LB: loop body
LE: loop exit
PB: predicated region body
PF: predicated region fallthrough
CT: control target
= control target key end

     0   :  { %13 = vsyncpa [#allocation3], 0  ;;  %s1983_s0 = inlined_call_operand.vmem [shape: f32[16,32], index: 0, kind: input, shape index: {}]   ;;  %s1984_s1 = inlined_call_operand.vmem [shape: f32[2,16,32], index: 1, kind: input, shape index: {}]   ;;  %s1985_s2 = inlined_call_operand.hbm [shape: f32[16,16], index: 2, kind: input, shape index: {}]   ;;  %s1986_s3 = inlined_call_operand.hbm [shape: bf16[4,32,32], index: 3, kind: input, shape index: {}]   ;;  %s1987_s4 = inlined_call_operand.hbm [shape: bf16[32,64], index: 4, kind: input, shape index: {}]   ;;  %s1988_s5 = inlined_call_operand.vmem [shape: bf16[64,32], index: 5, kind: input, shape index: {}]   ;;  %s1989_s6 = inlined_call_operand.hbm [shape: f32[9,32], index: 6, kind: input, shape index: {}]   ;;  %s1990_s7 = inlined_call_operand.vmem [shape: f32[1,64], index: 7, kind: input, shape index: {}]   ;;  %s1991_s8 = inlined_call_operand.hbm [shape: f32[16,32], index: 8, kind: output, shape index: {}]  }
   0x1   :  { %14 = vsyncpa [#allocation6], 0 }
   0x2   :  { %15 = vsyncpa [#allocation9], 0 }
   0x3   :  { %16 = vsyncpa [#allocation4], 0  ;;  %s1655_s27 = smov [#allocation5]   ;;  %s1537_s9 = scalar_lea.hbm %s1986_s3, 1024 }
   0x4   :  { %s38_s28 = sshll.u32 %s1655_s27, 4  ;;  %p1538_p0 = scmp.ne.s32.totalorder %s1986_s3, %s1537_s9  ;;  %s39_s28 = int_to_ptr.vmem [resolvable:$true] %s38_s28 }
   0x5   :  { %p1541_p1 = scmp.lt.u32.totalorder %s1537_s9, %s1986_s3 }
   0x7   :  { %p1543_p2 = pnand %p1541_p1, %p1538_p0 }
   0x9   :  { %1546 = shalt.err (!%p1543_p2)
}
   0xa   :  { %s1547_s14 = scalar_lea.vmem %s39_s28, 1024  ;;  %p1552_p4 = scmp.lt.s32.totalorder %s39_s28, %s39_s28 }
   0xb   :  { %p1548_p3 = scmp.ne.s32.totalorder %s39_s28, %s1547_s14  ;;  %p1553_p5 = scmp.lt.s32.totalorder %s1547_s14, %s1547_s14 }
   0xd   :  { %p1554_p6 = por %p1553_p5, %p1552_p4 }
   0xf   :  { %p1555_p7 = pnand %p1554_p6, %p1548_p3 }
  0x11   :  { %1558 = shalt.err (!%p1555_p7)
}
  0x12   :  { %s1656_s15 = smov 64   ;;  %s1657_s16 = smov 4  }
  0x13   :  { %44 = dma.hbm_to_vmem [thread:$0]  %s1986_s3, 1024, %s39_s28, [#allocation6], %s1656_s15, %s1656_s15, %s1657_s16  }
  0x14   :  { %s1658_s19 = smov [#allocation2]   ;;  %s1559_s23 = scalar_lea.hbm %s1985_s2, 256 }
  0x15   :  { %s26_s20 = sshll.u32 %s1658_s19, 4  ;;  %p1560_p8 = scmp.ne.s32.totalorder %s1985_s2, %s1559_s23  ;;  %s27_s20 = int_to_ptr.vmem [resolvable:$true] %s26_s20 }
  0x16   :  { %p1563_p9 = scmp.lt.u32.totalorder %s1559_s23, %s1985_s2 }
  0x18   :  { %p1565_p10 = pnand %p1563_p9, %p1560_p8 }
  0x1a   :  { %1568 = shalt.err (!%p1565_p10)
}
  0x1b   :  { %s1569_s29 = scalar_lea.vmem %s27_s20, 256  ;;  %p1574_p12 = scmp.lt.s32.totalorder %s27_s20, %s27_s20 }
  0x1c   :  { %p1570_p11 = scmp.ne.s32.totalorder %s27_s20, %s1569_s29  ;;  %p1575_p13 = scmp.lt.s32.totalorder %s1569_s29, %s1569_s29 }
  0x1e   :  { %p1576_p0 = por %p1575_p13, %p1574_p12 }
  0x20   :  { %p1577_p1 = pnand %p1576_p0, %p1570_p11 }
  0x22   :  { %1580 = shalt.err (!%p1577_p1)
}
  0x23   :  { %s1659_s3 = smov 128   ;;  %s1660_s28 = smov 8  }
  0x24   :  { %32 = dma.hbm_to_vmem [thread:$0]  %s1985_s2, 256, %s27_s20, [#allocation3], %s1659_s3, %s1659_s3, %s1660_s28  }
  0x25   :  { %s1661_s10 = smov [#allocation7]   ;;  %s1662_s12 = smov [#allocation8]  }
  0x26   :  { %s50_s11 = sshll.u32 %s1661_s10, 4  ;;  %s64_s13 = sshll.u32 %s1662_s12, 4  ;;  %s51_s11 = int_to_ptr.vmem [resolvable:$true] %s50_s11  ;;  %s1746_s13 = int_to_ptr.vmem [resolvable:$true] %s64_s13 }
  0x27   :  { %s1581_s18 = scalar_lea.hbm %s1987_s4, 256 }
  0x28   :  { %p1582_p2 = scmp.ne.s32.totalorder %s1987_s4, %s1581_s18  ;;  %p1585_p3 = scmp.lt.u32.totalorder %s1581_s18, %s1987_s4 }
  0x2a   :  { %p1587_p4 = pnand %p1585_p3, %p1582_p2 }
  0x2c   :  { %1590 = shalt.err (!%p1587_p4)
}
  0x2d   :  { %s1591_s2 = scalar_lea.vmem %s51_s11, 256  ;;  %p1596_p6 = scmp.lt.s32.totalorder %s51_s11, %s51_s11 }
  0x2e   :  { %p1592_p5 = scmp.ne.s32.totalorder %s51_s11, %s1591_s2  ;;  %p1597_p7 = scmp.lt.s32.totalorder %s1591_s2, %s1591_s2 }
  0x30   :  { %p1598_p8 = por %p1597_p7, %p1596_p6 }
  0x32   :  { %p1599_p9 = pnand %p1598_p8, %p1592_p5 }
  0x34   :  { %1602 = shalt.err (!%p1599_p9)
}
  0x35   :  { %56 = dma.hbm_to_vmem [thread:$0]  %s1987_s4, 256, %s51_s11, [#allocation6], %s1656_s15, %s1656_s15, %s1657_s16  }
  0x36   :  { %s1603_s27 = scalar_lea.hbm %s1989_s6, 256 }
  0x37   :  { %p1604_p10 = scmp.ne.s32.totalorder %s1989_s6, %s1603_s27  ;;  %p1607_p11 = scmp.lt.u32.totalorder %s1603_s27, %s1989_s6 }
  0x39   :  { %p1609_p12 = pnand %p1607_p11, %p1604_p10 }
  0x3b   :  { %1612 = shalt.err (!%p1609_p12)
}
  0x3c   :  { %s1613_s12 = scalar_lea.vmem %s1746_s13, 256  ;;  %p1618_p0 = scmp.lt.s32.totalorder %s1746_s13, %s1746_s13 }
  0x3d   :  { %p1614_p13 = scmp.ne.s32.totalorder %s1746_s13, %s1613_s12  ;;  %p1619_p1 = scmp.lt.s32.totalorder %s1613_s12, %s1613_s12 }
  0x3f   :  { %p1620_p2 = por %p1619_p1, %p1618_p0 }
  0x41   :  { %p1621_p3 = pnand %p1620_p2, %p1614_p13 }
  0x43   :  { %1624 = shalt.err (!%p1621_p3)
}
  0x44   :  { %70 = dma.hbm_to_vmem [thread:$0]  %s1989_s6, 256, %s1746_s13, [#allocation9], %s1659_s3, %s1659_s3, %s1660_s28  }
  0x45   :  { %1647 = dma.done.wait [#allocation3], 256  }
  0x46   :  { %1648 = vsyncadd [#allocation3], 4294967040 }
  0x47   :  { %1649 = dma.done.wait [#allocation6], 1280  }
  0x48   :  { %1650 = vsyncadd [#allocation6], 4294966016 }
  0x49   :  { %1651 = dma.done.wait [#allocation9], 256  }
  0x4a   :  { %1652 = vsyncadd [#allocation9], 4294967040  ;;  %v1663_v0 = vmov 0.0   ;;  %vm1664_vm0 = vmmov 0   ;;  %v1471_v1 = vld [vmem:[#allocation5] sm:$0xff]   ;;  %v1472_v2 = vld [vmem:[#allocation5 + $0x10] sm:$0xff]   ;;  %v115_v13 = vlaneseq }
  0x4b   :  { %1295 = vmatprep.subr.bf16.mxu0 %v1663_v0  ;;  %1303 = vmatprep.subr.bf16.mxu1 %v1663_v0  ;;  %v1473_v3 = vld [vmem:[#allocation5 + $0x8] sm:$0xff]   ;;  %v1474_v4 = vld [vmem:[#allocation5 + $0x18] sm:$0xff]   ;;  %v1794_v5 = vld [vmem:[%s1983_s0] sm:$0xff]  ;;  %vm131_vm1 = vcmask 261120   ;;  %vm370_vm2 = vcmask 64512   ;;  %s1666_s2 = smov 104  }
  0x4c   :  { %1299 = vmatprep.mubr.msk.bf16.mxu0 %vm1664_vm0, %v1663_v0  ;;  %1307 = vmatprep.mubr.msk.bf16.mxu1 %vm1664_vm0, %v1663_v0  ;;  %v1799_v6 = vld [vmem:[%s1983_s0 + $0x8] sm:$0xff]  ;;  %v88_v7 = vld [vmem:[%s1984_s1] sm:$0xff]  ;;  %v1475_v11 = vld [vmem:[#allocation5 + $0x20] sm:$0xff]   ;;  %v1819_v14 = vshrl.u32 %v115_v13, 7  ;;  %s1667_s20 = smov 112   ;;  %vm575_vm4 = vcmask 130048  }
  0x4d   :  { %1296 = vmatpush3.bf16.msra.mxu0 %v1471_v1  ;;  %1304 = vmatpush3.bf16.msra.mxu1 %v1472_v2  ;;  %v114_v8 = vpack.c.bf16 %v1799_v6, %v1794_v5  ;;  %v89_v9 = vld [vmem:[%s1984_s1 + $0x8] sm:$0xff]  ;;  %v1476_v12 = vld [vmem:[#allocation5 + $0x28] sm:$0xff]   ;;  %v1227_v16 = vld [vmem:[%s1984_s1 + $0x10] sm:$0xff]  ;;  %s1668_s24 = smov 16   ;;  %s1669_s25 = smov 24   ;;  %vm872_vm6 = vcmask 195584  }
  0x4e   :  { %1297 = vmatprep.subr.bf16.mxu0 %v1663_v0  ;;  %1305 = vmatprep.subr.bf16.mxu1 %v1663_v0  ;;  %v176_v10 = vpack.c.bf16 %v89_v9, %v88_v7  ;;  %v117_v15 = vsub.s32 0, %v1819_v14  ;;  %v1228_v17 = vld [vmem:[%s1984_s1 + $0x18] sm:$0xff]  ;;  %v1828_v19 = vld [vmem:[#allocation8] sm:$0xff]  ;;  %v179_v20 = vsub.s32 1, %v1819_v14  ;;  %s1665_s1 = smov 120   ;;  %vm1107_vm11 = vcmask 523264  }
  0x4f   :  { %v237_v18 = vpack.c.bf16 %v1228_v17, %v1227_v16  ;;  %v559_v17 = vld [vmem:[#allocation2] sm:$0xff] }
  0x50   :  { %v118_v21 = vrot.slane %v1828_v19, %v117_v15  ;;  %v180_v23 = vrot.slane %v1828_v19, %v179_v20  ;;  %vm561_vm3 = vcmp.lt.f32.partialorder %v559_v17, -1.0 }
  0x51   :  { %1298 = vmatpush3.bf16.msra.mxu0 %v1473_v3  ;;  %1306 = vmatpush3.bf16.msra.mxu1 %v1474_v4  ;;  %v240_v4 = vsub.s32 2, %v1819_v14 }
  0x52   :  { %1311 = vmatprep.subr.bf16.mxu0 %v1663_v0  ;;  %1319 = vmatprep.subr.bf16.mxu1 %v1663_v0 }
  0x53   :  { %v241_v7 = vrot.slane %v1828_v19, %v240_v4 }
  0x54   :  { %1300 = vmatmul.mubr.msk.bf16.vlgmr.msra.gmra.mrb[0].mxu0 %vm131_vm1, %v114_v8  ;;  %1308 = vmatmul.mubr.msk.bf16.vlgmr.msra.gmra.mrb[0].mxu1 %vm131_vm1, %v176_v10 }
  0x55   :  { %1315 = vmatprep.mubr.msk.bf16.mxu0 %vm1664_vm0, %v1663_v0  ;;  %1321 = vmatprep.mubr.msk.bf16.mxu1 %vm1664_vm0, %v1663_v0 }
  0x56   :  { %1312 = vmatpush3.bf16.msra.mxu0 %v1475_v11 }
  0x57   :  { %1313 = vmatprep.subr.bf16.mxu0 %v1663_v0 }
  0x5a   :  { %1314 = vmatpush3.bf16.msra.mxu0 %v1476_v12 }
  0x5b   :  { %1325 = vmatprep.subr.bf16.mxu0 %v1663_v0 }
  0x5d   :  { %1316 = vmatmul.mubr.msk.bf16.vlgmr.msra.gmra.mrb[4].mxu0 %vm131_vm1, %v237_v18  ;;  %v560_v18 = vld [vmem:[#allocation2 + $0x8] sm:$0xff] }
  0x5e   :  { %1327 = vmatprep.mubr.msk.bf16.mxu0 %vm1664_vm0, %v1663_v0  ;;  %vm562_vm5 = vcmp.lt.f32.partialorder %v560_v18, -1.0 }
 0x127   :  { %v169_v22 = vpop.f32.mrb[0].mxu0  ;;  %v230_v25 = vpop.f32.mrb[0].mxu1 }
 0x128   :  { %v170_v24 = vadd.f32 %v169_v22, %v118_v21  ;;  %v1301_v26 = vpop.f32.mrb[1].mxu0  ;;  %v1309_v27 = vpop.f32.mrb[1].mxu1  ;;  %v231_v32 = vadd.f32 %v230_v25, %v180_v23 }
 0x129   :  { %v172_v28 = vpop.f32.mrb[2].mxu0  ;;  %v233_v30 = vpop.f32.mrb[2].mxu1 }
 0x12a   :  { %v173_v29 = vadd.f32 %v172_v28, %v118_v21  ;;  %v1302_v31 = vpop.f32.mrb[3].mxu0  ;;  %v234_v33 = vadd.f32 %v233_v30, %v180_v23  ;;  %v1310_v34 = vpop.f32.mrb[3].mxu1 }
 0x12c   :  { %v318_v35 = vpack.c.bf16 %v173_v29, %v170_v24  ;;  %v1421_v36 = vpack.i.bf16 %v173_v29, %v170_v24  ;;  %v1411_v37 = vpack.i.bf16 %v234_v33, %v231_v32  ;;  %v342_v38 = vpack.c.bf16 %v234_v33, %v231_v32 }
 0x12e   :  { %1422 = vrot.lane.b32.xlu1 %v1421_v36, %s1665_s1  ;;  %1412 = vrot.lane.b32.xlu0 %v1411_v37, %s1665_s1  ;;  %v375_v39 = vsel %vm370_vm2, %v342_v38, 0 }
 0x12f   :  { %1320 = vmatpush3.bf16.xpose.msra.mxu1 %v375_v39 }
 0x130   :  { %1331 = vmatprep.subr.bf16.mxu1 %v1663_v0  ;;  %v291_v8 = vpop.f32.mrb[4].mxu0 }
 0x131   :  { %v292_v9 = vadd.f32 %v291_v8, %v241_v7  ;;  %v1317_v10 = vpop.f32.mrb[5].mxu0 }
 0x132   :  { %1427 = vrot.lane.b32.xlu1 %v1411_v37, %s1666_s2  ;;  %1417 = vrot.lane.b32.xlu0 %v1411_v37, %s1667_s20  ;;  %v294_v11 = vpop.f32.mrb[6].mxu0 }
 0x133   :  { %v295_v12 = vadd.f32 %v294_v11, %v241_v7  ;;  %v1318_v13 = vpop.f32.mrb[7].mxu0 }
 0x135   :  { %v366_v15 = vpack.c.bf16 %v295_v12, %v292_v9  ;;  %v1864_v16 = vpack.i.bf16 %v295_v12, %v292_v9 }
 0x136   :  { %1437 = vrot.lane.b32.xlu1 %v1421_v36, %s1666_s2  ;;  %1432 = vrot.lane.b32.xlu0 %v1421_v36, %s1667_s20 }
 0x137   :  { %1322 = vmatmul.mubr.msk.bf16.vlgmr.msra.gmra.mrb[4].mxu1 %vm370_vm2, %v318_v35 }
 0x138   :  { %1333 = vmatprep.mubr.msk.bf16.mxu1 %vm1664_vm0, %v1663_v0 }
 0x1a0   :  { %v1423_v40 = vpop.permute.xlu1 %1422  ;;  %v1413_v41 = vpop.permute.xlu0 %1412 }
 0x1a1   :  { %v1415_v42 = vunpack.i.h.bf16 %v1413_v41  ;;  %v1414_v43 = vunpack.i.l.bf16 %v1413_v41  ;;  %v1425_v52 = vunpack.i.h.bf16 %v1423_v40  ;;  %v1424_v53 = vunpack.i.l.bf16 %v1423_v40 }
 0x1a3   :  { %v343_v44 = vpack.c.bf16 %v1415_v42, %v1414_v43  ;;  %v319_v58 = vpack.c.bf16 %v1425_v52, %v1424_v53 }
 0x1a4   :  { %v1428_v45 = vpop.permute.xlu1 %1427  ;;  %v1418_v46 = vpop.permute.xlu0 %1417 }
 0x1a5   :  { %v1430_v47 = vunpack.i.h.bf16 %v1428_v45  ;;  %v1420_v48 = vunpack.i.h.bf16 %v1418_v46  ;;  %v1419_v49 = vunpack.i.l.bf16 %v1418_v46  ;;  %v1429_v50 = vunpack.i.l.bf16 %v1428_v45 }
 0x1a6   :  { %v422_v51 = vsel %vm370_vm2, %v343_v44, 0 }
 0x1a7   :  { %1326 = vmatpush3.bf16.xpose.msra.mxu0 %v422_v51  ;;  %v344_v54 = vpack.c.bf16 %v1420_v48, %v1419_v49  ;;  %v345_v56 = vpack.c.bf16 %v1430_v47, %v1429_v50 }
 0x1a8   :  { %1337 = vmatprep.subr.bf16.mxu0 %v1663_v0  ;;  %v1433_v55 = vpop.permute.xlu0 %1432  ;;  %v1438_v61 = vpop.permute.xlu1 %1437 }
 0x1a9   :  { %v469_v57 = vsel %vm370_vm2, %v344_v54, 0  ;;  %v1435_v59 = vunpack.i.h.bf16 %v1433_v55  ;;  %v1434_v60 = vunpack.i.l.bf16 %v1433_v55  ;;  %v516_v62 = vsel %vm370_vm2, %v345_v56, 0 }
 0x1aa   :  { %1332 = vmatpush3.bf16.xpose.msra.mxu1 %v469_v57  ;;  %v1440_v1 = vunpack.i.h.bf16 %v1438_v61  ;;  %v1439_v2 = vunpack.i.l.bf16 %v1438_v61 }
 0x1ab   :  { %1343 = vmatprep.subr.bf16.mxu1 %v1663_v0  ;;  %v320_v63 = vpack.c.bf16 %v1435_v59, %v1434_v60 }
 0x1ac   :  { %v321_v3 = vpack.c.bf16 %v1440_v1, %v1439_v2 }
 0x1ae   :  { %1328 = vmatmul.mubr.msk.bf16.vlgmr.msra.gmra.mrb[8].mxu0 %vm370_vm2, %v319_v58 }
 0x1af   :  { %1338 = vmatpush3.bf16.xpose.msra.mxu0 %v516_v62  ;;  %1339 = vmatprep.mubr.msk.bf16.mxu0 %vm1664_vm0, %v1663_v0 }
 0x1b0   :  { %1349 = vmatprep.subr.bf16.mxu0 %v1663_v0 }
 0x1b1   :  { %1334 = vmatmul.mubr.msk.bf16.vlgmr.msra.gmra.mrb[8].mxu1 %vm370_vm2, %v320_v63 }
 0x1b2   :  { %1345 = vmatprep.mubr.msk.bf16.mxu1 %vm1664_vm0, %v1663_v0  ;;  %1344 = vmatpush3.bf16.msra.mxu1 %v366_v15 }
 0x1b3   :  { %1355 = vmatprep.subr.bf16.mxu1 %v1663_v0 }
 0x1b6   :  { %1340 = vmatmul.mubr.msk.bf16.vlgmr.msra.gmra.mrb[12].mxu0 %vm370_vm2, %v321_v3 }
 0x1b7   :  { %1351 = vmatprep.mubr.msk.bf16.mxu0 %vm1664_vm0, %v1663_v0 }
 0x20a   :  { %v411_v20 = vpop.f32.mrb[4].mxu1 }
 0x20b   :  { %v1323_v21 = vpop.f32.mrb[5].mxu1  ;;  %v567_v22 = vsel %vm561_vm3, %v559_v17, %v411_v20 }
 0x20c   :  { %v414_v23 = vpop.f32.mrb[6].mxu1  ;;  %v576_v24 = vsel %vm575_vm4, %v567_v22, -inf }
 0x20d   :  { %577 = vmax.xlane.f32.xlu0 %v576_v24  ;;  %v1324_v25 = vpop.f32.mrb[7].mxu1  ;;  %v568_v26 = vsel %vm562_vm5, %v560_v18, %v414_v23 }
 0x20e   :  { %v579_v27 = vsel %vm575_vm4, %v568_v26, -inf }
 0x20f   :  { %580 = vmax.xlane.f32.xlu1 %v579_v27 }
 0x281   :  { %v458_v28 = vpop.f32.mrb[8].mxu0 }
 0x282   :  { %v1329_v29 = vpop.f32.mrb[9].mxu0  ;;  %v569_v30 = vsel %vm561_vm3, %v559_v17, %v458_v28 }
 0x283   :  { %v461_v31 = vpop.f32.mrb[10].mxu0  ;;  %v582_v32 = vsel %vm575_vm4, %v569_v30, -inf }
 0x284   :  { %583 = vmax.xlane.f32.xlu0 %v582_v32  ;;  %v1330_v33 = vpop.f32.mrb[11].mxu0  ;;  %v570_v34 = vsel %vm562_vm5, %v560_v18, %v461_v31  ;;  %v505_v35 = vpop.f32.mrb[8].mxu1 }
 0x285   :  { %v1335_v36 = vpop.f32.mrb[9].mxu1  ;;  %v571_v37 = vsel %vm561_vm3, %v559_v17, %v505_v35  ;;  %v585_v40 = vsel %vm575_vm4, %v570_v34, -inf }
 0x286   :  { %v508_v38 = vpop.f32.mrb[10].mxu1  ;;  %v588_v39 = vsel %vm575_vm4, %v571_v37, -inf }
 0x287   :  { %589 = vmax.xlane.f32.xlu1 %v588_v39  ;;  %v1336_v41 = vpop.f32.mrb[11].mxu1  ;;  %v572_v42 = vsel %vm562_vm5, %v560_v18, %v508_v38 }
 0x288   :  { %586 = vmax.xlane.f32.xlu0 %v585_v40  ;;  %v591_v47 = vsel %vm575_vm4, %v572_v42, -inf }
 0x289   :  { %v552_v43 = vpop.f32.mrb[12].mxu0 }
 0x28a   :  { %v1341_v44 = vpop.f32.mrb[13].mxu0  ;;  %v573_v45 = vsel %vm561_vm3, %v559_v17, %v552_v43 }
 0x28b   :  { %v555_v46 = vpop.f32.mrb[14].mxu0  ;;  %v594_v48 = vsel %vm575_vm4, %v573_v45, -inf }
 0x28c   :  { %592 = vmax.xlane.f32.xlu0 %v591_v47  ;;  %595 = vmax.xlane.f32.xlu1 %v594_v48  ;;  %v1342_v49 = vpop.f32.mrb[15].mxu0  ;;  %v574_v50 = vsel %vm562_vm5, %v560_v18, %v555_v46 }
 0x28d   :  { %v597_v51 = vsel %vm575_vm4, %v574_v50, -inf }
 0x290   :  { %598 = vmax.xlane.f32.xlu0 %v597_v51 }
 0x29a   :  { %v578_v55 = vpop.xlane.xlu0 %577 }
 0x29b   :  { %v600_v57 = vsub.f32 %v567_v22, %v578_v55 }
 0x29c   :  { %v581_v52 = vpop.xlane.xlu1 %580 }
 0x29d   :  { %v601_v53 = vsub.f32 %v568_v26, %v581_v52  ;;  %1442 = vrot.lane.b32.xlu1 %v1864_v16, %s1665_s1  ;;  %v608_v59 = vmul.f32 1.442695, %v600_v57 }
 0x29f   :  { %v610_v54 = vmul.f32 1.442695, %v601_v53 }
 0x2a1   :  { %1485 = vpow2.f32 %v610_v54 }
 0x2a2   :  { %1487 = vpow2.f32 %v608_v59 }
 0x2ab   :  { %v1885_v56 = vpop.eup %1485 }
 0x2ac   :  { %v627_v58 = vsel %vm575_vm4, %v1885_v56, 0.0  ;;  %v1488_v60 = vpop.eup %1487 }
 0x2ad   :  { %628 = vadd.xlane.f32.xlu0 %v627_v58  ;;  %v624_v61 = vsel %vm575_vm4, %v1488_v60, 0.0 }
 0x2c1   :  { %625 = vadd.xlane.f32.xlu1 %v624_v61 }
 0x311   :  { %v584_v62 = vpop.xlane.xlu0 %583 }
 0x312   :  { %v602_v63 = vsub.f32 %v569_v30, %v584_v62 }
 0x314   :  { %v612_v1 = vmul.f32 1.442695, %v602_v63  ;;  %v590_v2 = vpop.xlane.xlu1 %589 }
 0x315   :  { %v587_v3 = vpop.xlane.xlu0 %586  ;;  %v604_v4 = vsub.f32 %v571_v37, %v590_v2 }
 0x316   :  { %1489 = vpow2.f32 %v612_v1  ;;  %v603_v7 = vsub.f32 %v570_v34, %v587_v3 }
 0x317   :  { %v616_v8 = vmul.f32 1.442695, %v604_v4 }
 0x318   :  { %v614_v9 = vmul.f32 1.442695, %v603_v7 }
 0x319   :  { %v593_v10 = vpop.xlane.xlu0 %592  ;;  %v596_v11 = vpop.xlane.xlu1 %595  ;;  %1491 = vpow2.f32 %v616_v8 }
 0x31a   :  { %v605_v12 = vsub.f32 %v572_v42, %v593_v10  ;;  %v606_v13 = vsub.f32 %v573_v45, %v596_v11  ;;  %1493 = vpow2.f32 %v614_v9 }
 0x31c   :  { %v618_v15 = vmul.f32 1.442695, %v605_v12  ;;  %v620_v17 = vmul.f32 1.442695, %v606_v13 }
 0x31d   :  { %v1443_v18 = vpop.permute.xlu1 %1442  ;;  %v599_v20 = vpop.xlane.xlu0 %598 }
 0x31e   :  { %1495 = vpow2.f32 %v618_v15  ;;  %v1445_v21 = vunpack.i.h.bf16 %v1443_v18  ;;  %v1444_v22 = vunpack.i.l.bf16 %v1443_v18  ;;  %v607_v23 = vsub.f32 %v574_v50, %v599_v20  ;;  %v1477_v18 = vld [vmem:[#allocation5 + $0x30] sm:$0xff]  }
 0x31f   :  { %1497 = vpow2.f32 %v620_v17 }
 0x320   :  { %v1490_v24 = vpop.eup %1489  ;;  %v367_v25 = vpack.c.bf16 %v1445_v21, %v1444_v22  ;;  %v622_v26 = vmul.f32 1.442695, %v607_v23  ;;  %v1478_v22 = vld [vmem:[#allocation5 + $0x38] sm:$0xff]  }
 0x321   :  { %v630_v27 = vsel %vm575_vm4, %v1490_v24, 0.0 }
 0x322   :  { %1499 = vpow2.f32 %v622_v26  ;;  %631 = vadd.xlane.f32.xlu1 %v630_v27  ;;  %1350 = vmatpush3.bf16.msra.mxu0 %v367_v25 }
 0x323   :  { %1361 = vmatprep.subr.bf16.mxu0 %v1663_v0  ;;  %v1492_v28 = vpop.eup %1491 }
 0x324   :  { %v1494_v29 = vpop.eup %1493  ;;  %v636_v30 = vsel %vm575_vm4, %v1492_v28, 0.0 }
 0x325   :  { %v633_v31 = vsel %vm575_vm4, %v1494_v29, 0.0 }
 0x326   :  { %637 = vadd.xlane.f32.xlu1 %v636_v30  ;;  %634 = vadd.xlane.f32.xlu0 %v633_v31 }
 0x328   :  { %v1496_v32 = vpop.eup %1495 }
 0x329   :  { %v1498_v33 = vpop.eup %1497  ;;  %v639_v34 = vsel %vm575_vm4, %v1496_v32, 0.0 }
 0x32a   :  { %v642_v35 = vsel %vm575_vm4, %v1498_v33, 0.0  ;;  %640 = vadd.xlane.f32.xlu0 %v639_v34 }
 0x32b   :  { %643 = vadd.xlane.f32.xlu1 %v642_v35 }
 0x32c   :  { %v1500_v36 = vpop.eup %1499 }
 0x32d   :  { %v645_v37 = vsel %vm575_vm4, %v1500_v36, 0.0 }
 0x32e   :  { %646 = vadd.xlane.f32.xlu0 %v645_v37 }
 0x33a   :  { %v629_v38 = vpop.xlane.xlu0 %628 }
 0x33b   :  { %1501 = vrcp.f32 %v629_v38 }
 0x33c   :  { %1452 = vrot.lane.b32.xlu1 %v1864_v16, %s1666_s2 }
 0x344   :  { %1447 = vrot.lane.b32.xlu0 %v1864_v16, %s1667_s20 }
 0x345   :  { %v1502_v40 = vpop.eup %1501 }
 0x346   :  { %v657_v42 = vmul.f32 %v1502_v40, %v1885_v56 }
 0x34e   :  { %v626_v39 = vpop.xlane.xlu1 %625 }
 0x34f   :  { %1503 = vrcp.f32 %v626_v39 }
 0x359   :  { %v1504_v41 = vpop.eup %1503 }
 0x35a   :  { %v656_v43 = vmul.f32 %v1504_v41, %v1488_v60 }
 0x35c   :  { %v664_v44 = vpack.c.bf16 %v657_v42, %v656_v43 }
 0x35e   :  { %1346 = vmatmul.mubr.msk.bf16.vlgmr.msra.gmra.mrb[12].mxu1 %vm575_vm4, %v664_v44 }
 0x35f   :  { %1357 = vmatprep.mubr.msk.bf16.mxu1 %vm1664_vm0, %v1663_v0 }
 0x3af   :  { %v632_v45 = vpop.xlane.xlu1 %631 }
 0x3b0   :  { %1505 = vrcp.f32 %v632_v45 }
 0x3b3   :  { %v638_v46 = vpop.xlane.xlu1 %637  ;;  %v635_v47 = vpop.xlane.xlu0 %634 }
 0x3b4   :  { %1507 = vrcp.f32 %v635_v47 }
 0x3b5   :  { %1509 = vrcp.f32 %v638_v46 }
 0x3b7   :  { %v641_v48 = vpop.xlane.xlu0 %640 }
 0x3b8   :  { %v644_v16 = vpop.xlane.xlu1 %643  ;;  %1511 = vrcp.f32 %v641_v48 }
 0x3b9   :  { %1513 = vrcp.f32 %v644_v16 }
 0x3ba   :  { %v1506_v51 = vpop.eup %1505 }
 0x3bb   :  { %v647_v50 = vpop.xlane.xlu0 %646  ;;  %v658_v55 = vmul.f32 %v1506_v51, %v1490_v24  ;;  %v878_v51 = vsub.s32 3, %v1819_v14 }
 0x3bc   :  { %v1453_v49 = vpop.permute.xlu1 %1452  ;;  %1515 = vrcp.f32 %v647_v50 }
 0x3bd   :  { %v1455_v53 = vunpack.i.h.bf16 %v1453_v49  ;;  %v1454_v54 = vunpack.i.l.bf16 %v1453_v49 }
 0x3be   :  { %v1508_v52 = vpop.eup %1507 }
 0x3bf   :  { %v659_v56 = vmul.f32 %v1508_v52, %v1494_v29  ;;  %v1448_v57 = vpop.permute.xlu0 %1447  ;;  %v1510_v60 = vpop.eup %1509  ;;  %v369_v62 = vpack.c.bf16 %v1455_v53, %v1454_v54  ;;  %v879_v52 = vrot.slane %v1828_v19, %v878_v51 }
 0x3c0   :  { %v1450_v58 = vunpack.i.h.bf16 %v1448_v57  ;;  %v1449_v59 = vunpack.i.l.bf16 %v1448_v57  ;;  %v660_v3 = vmul.f32 %v1510_v60, %v1492_v28 }
 0x3c1   :  { %v665_v61 = vpack.c.bf16 %v659_v56, %v658_v55 }
 0x3c2   :  { %v368_v63 = vpack.c.bf16 %v1450_v58, %v1449_v59  ;;  %v1512_v1 = vpop.eup %1511 }
 0x3c3   :  { %1352 = vmatmul.mubr.msk.bf16.vlgmr.msra.gmra.mrb[16].mxu0 %vm575_vm4, %v665_v61  ;;  %v1514_v2 = vpop.eup %1513  ;;  %v661_v4 = vmul.f32 %v1512_v1, %v1496_v32 }
 0x3c4   :  { %1362 = vmatpush3.bf16.msra.mxu0 %v369_v62  ;;  %1356 = vmatpush3.bf16.msra.mxu1 %v368_v63  ;;  %v662_v9 = vmul.f32 %v1514_v2, %v1498_v33 }
 0x3c5   :  { %1363 = vmatprep.mubr.msk.bf16.mxu0 %vm1664_vm0, %v1663_v0  ;;  %1367 = vmatprep.subr.bf16.mxu1 %v1663_v0  ;;  %v666_v8 = vpack.c.bf16 %v661_v4, %v660_v3 }
 0x3c6   :  { %v1516_v7 = vpop.eup %1515  ;;  %1375 = vmatprep.subr.bf16.mxu0 %v1663_v0 }
 0x3c7   :  { %v663_v10 = vmul.f32 %v1516_v7, %v1500_v36  ;;  %1358 = vmatmul.mubr.msk.bf16.vlgmr.msra.gmra.mrb[16].mxu1 %vm575_vm4, %v666_v8 }
 0x3c8   :  { %1371 = vmatprep.mubr.msk.bf16.mxu1 %vm1664_vm0, %v1663_v0  ;;  %1368 = vmatpush3.bf16.msra.mxu1 %v1477_v18 }
 0x3c9   :  { %v667_v11 = vpack.c.bf16 %v663_v10, %v662_v9  ;;  %1369 = vmatprep.subr.bf16.mxu1 %v1663_v0 }
 0x3cb   :  { %1364 = vmatmul.mubr.msk.bf16.vlgmr.msra.gmra.mrb[20].mxu0 %vm575_vm4, %v667_v11  ;;  %v1479_v11 = vld [vmem:[#allocation7] sm:$0xff]  }
 0x3cc   :  { %1379 = vmatprep.mubr.msk.bf16.mxu0 %vm1664_vm0, %v1663_v0  ;;  %1370 = vmatpush3.bf16.msra.mxu1 %v1478_v22 }
 0x3cd   :  { %1383 = vmatprep.subr.bf16.mxu1 %v1663_v0  ;;  %1376 = vmatpush3.bf16.msra.mxu0 %v1479_v11 }
 0x3ce   :  { %1377 = vmatprep.subr.bf16.mxu0 %v1663_v0 }
 0x431   :  { %v705_v12 = vpop.f32.mrb[12].mxu1 }
 0x432   :  { %v1347_v13 = vpop.f32.mrb[13].mxu1 }
 0x433   :  { %v708_v15 = vpop.f32.mrb[14].mxu1 }
 0x434   :  { %v1348_v17 = vpop.f32.mrb[15].mxu1 }
 0x496   :  { %v749_v20 = vpop.f32.mrb[16].mxu0 }
 0x497   :  { %v1353_v21 = vpop.f32.mrb[17].mxu0 }
 0x498   :  { %v752_v23 = vpop.f32.mrb[18].mxu0 }
 0x499   :  { %v1456_v24 = vpack.i.bf16 %v752_v23, %v749_v20  ;;  %v1354_v25 = vpop.f32.mrb[19].mxu0 }
 0x49a   :  { %v793_v26 = vpop.f32.mrb[16].mxu1 }
 0x49b   :  { %1457 = vrot.lane.b32.xlu1 %v1456_v24, %s1660_s28  ;;  %v1359_v27 = vpop.f32.mrb[17].mxu1 }
 0x49c   :  { %v796_v28 = vpop.f32.mrb[18].mxu1 }
 0x49d   :  { %v1461_v29 = vpack.i.bf16 %v796_v28, %v793_v26  ;;  %v1360_v30 = vpop.f32.mrb[19].mxu1 }
 0x49e   :  { %v837_v31 = vpop.f32.mrb[20].mxu0 }
 0x49f   :  { %v1365_v32 = vpop.f32.mrb[21].mxu0  ;;  %1462 = vrot.lane.b32.xlu0 %v1461_v29, %s1668_s24 }
 0x4a0   :  { %v840_v33 = vpop.f32.mrb[22].mxu0 }
 0x4a1   :  { %v1466_v34 = vpack.i.bf16 %v840_v33, %v837_v31  ;;  %v1366_v35 = vpop.f32.mrb[23].mxu0  ;;  %v976_v31 = vsub.s32 4, %v1819_v14  ;;  %v988_v33 = vsub.s32 5, %v1819_v14 }
 0x4a3   :  { %1467 = vrot.lane.b32.xlu1 %v1466_v34, %s1669_s25  ;;  %v977_v32 = vrot.slane %v1828_v19, %v976_v31 }
 0x50d   :  { %v1458_v36 = vpop.permute.xlu1 %1457 }
 0x50e   :  { %v1460_v37 = vunpack.i.h.bf16 %v1458_v36  ;;  %v1459_v38 = vunpack.i.l.bf16 %v1458_v36 }
 0x510   :  { %v869_v43 = vsel %vm370_vm2, %v708_v15, %v1460_v37  ;;  %v868_v44 = vsel %vm370_vm2, %v705_v12, %v1459_v38  ;;  %v989_v38 = vrot.slane %v1828_v19, %v988_v33 }
 0x511   :  { %v1463_v39 = vpop.permute.xlu0 %1462 }
 0x512   :  { %v1465_v40 = vunpack.i.h.bf16 %v1463_v39  ;;  %v1464_v41 = vunpack.i.l.bf16 %v1463_v39 }
 0x514   :  { %v870_v47 = vsel %vm575_vm4, %v868_v44, %v1464_v41  ;;  %v871_v16 = vsel %vm575_vm4, %v869_v43, %v1465_v40  ;;  %v1481_v44 = vld [vmem:[%s1988_s5] sm:$0xff]  }
 0x515   :  { %v1468_v42 = vpop.permute.xlu1 %1467 }
 0x516   :  { %v1470_v45 = vunpack.i.h.bf16 %v1468_v42  ;;  %v1469_v46 = vunpack.i.l.bf16 %v1468_v42 }
 0x518   :  { %v874_v48 = vsel %vm872_vm6, %v871_v16, %v1470_v45  ;;  %v873_v49 = vsel %vm872_vm6, %v870_v47, %v1469_v46  ;;  %v1482_v45 = vld [vmem:[%s1988_s5 + $0x8] sm:$0xff]   ;;  %v1483_v46 = vld [vmem:[%s1988_s5 + $0x10] sm:$0xff]   ;;  %v1484_v47 = vld [vmem:[%s1988_s5 + $0x18] sm:$0xff]   ;;  %s1670_s5 = smov [#allocation10]  }
 0x519   :  { %v875_v50 = vpack.c.bf16 %v874_v48, %v873_v49  ;;  %v1249_v16 = vld [vmem:[%s1990_s7] ss:$0 sm:$0xff]  ;;  %s1213_s7 = sshll.u32 %s1670_s5, 4  ;;  %s1214_s7 = int_to_ptr.vmem [resolvable:$true] %s1213_s7 }
 0x51a   :  { %s1625_s16 = scalar_lea.vmem %s1214_s7, 256  ;;  %p1630_p5 = scmp.lt.s32.totalorder %s1214_s7, %s1214_s7 }
 0x51b   :  { %1372 = vmatmul.mubr.msk.bf16.vlgmr.msra.gmra.mrb[20].mxu1 %vm131_vm1, %v875_v50  ;;  %p1626_p4 = scmp.ne.s32.totalorder %s1214_s7, %s1625_s16  ;;  %p1631_p6 = scmp.lt.s32.totalorder %s1625_s16, %s1625_s16 }
 0x51c   :  { %1391 = vmatprep.mubr.msk.bf16.mxu1 %vm1664_vm0, %v1663_v0  ;;  %1384 = vmatpush3.bf16.msra.mxu1 %v1481_v44 }
 0x51d   :  { %1385 = vmatprep.subr.bf16.mxu1 %v1663_v0  ;;  %p1632_p7 = por %p1631_p6, %p1630_p5 }
 0x51f   :  { %p1633_p8 = pnand %p1632_p7, %p1626_p4 }
 0x520   :  { %1386 = vmatpush3.bf16.msra.mxu1 %v1482_v45 }
 0x521   :  { %1387 = vmatprep.subr.bf16.mxu1 %v1663_v0 }
 0x524   :  { %1388 = vmatpush3.bf16.msra.mxu1 %v1483_v46  ;;  %v1258_v46 = vld [vmem:[#allocation8 + $0x8] ss:$0 sm:$0xff] }
 0x525   :  { %1389 = vmatprep.subr.bf16.mxu1 %v1663_v0 }
 0x528   :  { %1390 = vmatpush3.bf16.msra.mxu1 %v1484_v47 }
 0x5ee   :  { %v929_v53 = vpop.f32.mrb[20].mxu1 }
 0x5ef   :  { %v930_v54 = vadd.f32 %v929_v53, %v879_v52  ;;  %v1373_v55 = vpop.f32.mrb[21].mxu1 }
 0x5f0   :  { %v932_v56 = vpop.f32.mrb[22].mxu1 }
 0x5f1   :  { %v933_v57 = vadd.f32 %v932_v56, %v879_v52  ;;  %v1374_v58 = vpop.f32.mrb[23].mxu1  ;;  %v936_v59 = vadd.f32 %v930_v54, %v1794_v5 }
 0x5f3   :  { %v938_v60 = vsel %vm131_vm1, %v936_v59, 0.0  ;;  %v937_v61 = vadd.f32 %v933_v57, %v1799_v6  ;;  %v1480_v6 = vld [vmem:[#allocation7 + $0x8] sm:$0xff]  }
 0x5f4   :  { %939 = vadd.xlane.f32.xlu0 %v938_v60  ;;  %1378 = vmatpush3.bf16.msra.mxu0 %v1480_v6 }
 0x5f5   :  { %v941_v62 = vsel %vm131_vm1, %v937_v61, 0.0 }
 0x5f6   :  { %942 = vadd.xlane.f32.xlu1 %v941_v62 }
 0x681   :  { %v940_v63 = vpop.xlane.xlu0 %939 }
 0x682   :  { %v945_v1 = vmul.f32 0.03125, %v940_v63 }
 0x683   :  { %v943_v2 = vpop.xlane.xlu1 %942 }
 0x684   :  { %v947_v3 = vsub.f32 %v936_v59, %v945_v1  ;;  %v946_v4 = vmul.f32 0.03125, %v943_v2  ;;  %v1081_v1 = vsub.s32 6, %v1819_v14 }
 0x686   :  { %v948_v7 = vsub.f32 %v937_v61, %v946_v4  ;;  %v949_v8 = vmul.f32 %v947_v3, %v947_v3  ;;  %v978_v35 = vmul.f32 %v977_v32, %v947_v3  ;;  %v1082_v2 = vrot.slane %v1828_v19, %v1081_v1 }
 0x688   :  { %v951_v9 = vsel %vm131_vm1, %v949_v8, 0.0  ;;  %v950_v10 = vmul.f32 %v948_v7, %v948_v7  ;;  %v979_v36 = vmul.f32 %v977_v32, %v948_v7 }
 0x689   :  { %952 = vadd.xlane.f32.xlu0 %v951_v9 }
 0x68a   :  { %v954_v5 = vsel %vm131_vm1, %v950_v10, 0.0 }
 0x68d   :  { %955 = vadd.xlane.f32.xlu0 %v954_v5 }
 0x716   :  { %v953_v12 = vpop.xlane.xlu0 %952 }
 0x717   :  { %v958_v13 = vmul.f32 0.032258064, %v953_v12 }
 0x719   :  { %1517 = vrsqrt.f32 %v958_v13  ;;  %vm962_vm7 = vcmp.eq.f32.partialorder %v958_v13, inf  ;;  %v965_v21 = vand.u32 2147483648, %v958_v13  ;;  %vm964_vm8 = vcmp.eq.f32.partialorder %v958_v13, 0.0 }
 0x71a   :  { %v956_v15 = vpop.xlane.xlu0 %955 }
 0x71b   :  { %v959_v17 = vmul.f32 0.032258064, %v956_v15 }
 0x71d   :  { %1519 = vrsqrt.f32 %v959_v17  ;;  %vm969_vm9 = vcmp.eq.f32.partialorder %v959_v17, inf  ;;  %v972_v27 = vand.u32 2147483648, %v959_v17  ;;  %vm971_vm10 = vcmp.eq.f32.partialorder %v959_v17, 0.0 }
 0x723   :  { %v1518_v18 = vpop.eup %1517 }
 0x724   :  { %v961_v20 = vmul.f32 %v1518_v18, %v958_v13 }
 0x726   :  { %v963_v22 = vsel %vm962_vm7, %v958_v13, %v961_v20 }
 0x727   :  { %v1520_v23 = vpop.eup %1519  ;;  %v966_v24 = vsel %vm964_vm8, %v965_v21, %v963_v22 }
 0x728   :  { %v980_v25 = vadd.f32 1e-06, %v966_v24  ;;  %v968_v26 = vmul.f32 %v1520_v23, %v959_v17 }
 0x72a   :  { %1521 = vrcp.f32 %v980_v25  ;;  %v970_v28 = vsel %vm969_vm9, %v959_v17, %v968_v26 }
 0x72b   :  { %v973_v29 = vsel %vm971_vm10, %v972_v27, %v970_v28 }
 0x72c   :  { %v981_v30 = vadd.f32 1e-06, %v973_v29 }
 0x72e   :  { %1523 = vrcp.f32 %v981_v30 }
 0x734   :  { %v1522_v34 = vpop.eup %1521 }
 0x735   :  { %v983_v37 = vmul.f32 %v1522_v34, %v978_v35 }
 0x737   :  { %v990_v41 = vadd.f32 %v989_v38, %v983_v37 }
 0x738   :  { %v1524_v39 = vpop.eup %1523 }
 0x739   :  { %v985_v40 = vmul.f32 %v1524_v39, %v979_v36 }
 0x73b   :  { %v991_v42 = vadd.f32 %v989_v38, %v985_v40 }
 0x73d   :  { %v992_v43 = vpack.c.bf16 %v991_v42, %v990_v41 }
 0x73f   :  { %1380 = vmatmul.mubr.msk.bf16.vlgmr.msra.gmra.mrb[24].mxu0 %vm131_vm1, %v992_v43 }
 0x812   :  { %v1053_v48 = vpop.f32.mrb[24].mxu0 }
 0x813   :  { %v1054_v49 = vadd.f32 %v1249_v16, %v1053_v48  ;;  %v1381_v50 = vpop.f32.mrb[25].mxu0 }
 0x814   :  { %v1056_v51 = vpop.f32.mrb[26].mxu0 }
 0x815   :  { %v1062_v52 = vmul.f32 0.70710677, %v1054_v49  ;;  %v1057_v53 = vadd.f32 %v1249_v16, %v1056_v51  ;;  %v1382_v54 = vpop.f32.mrb[27].mxu0  ;;  %v1060_v58 = vmul.f32 0.5, %v1054_v49 }
 0x817   :  { %1525 = verf.f32 %v1062_v52  ;;  %v1063_v55 = vmul.f32 0.70710677, %v1057_v53  ;;  %v1061_v59 = vmul.f32 0.5, %v1057_v53 }
 0x819   :  { %1527 = verf.f32 %v1063_v55 }
 0x821   :  { %v1526_v0 = vpop.eup %1525 }
 0x822   :  { %v1066_v56 = vadd.f32 1.0, %v1526_v0 }
 0x823   :  { %v1528_v57 = vpop.eup %1527 }
 0x824   :  { %v1067_v60 = vadd.f32 1.0, %v1528_v57  ;;  %v1068_v61 = vmul.f32 %v1066_v56, %v1060_v58 }
 0x826   :  { %v1069_v62 = vmul.f32 %v1067_v60, %v1061_v59 }
 0x828   :  { %v1070_v63 = vpack.c.bf16 %v1069_v62, %v1068_v61 }
 0x82a   :  { %1392 = vmatmul.mubr.msk.bf16.vlgmr.msra.gmra.mrb[24].mxu1 %vm1107_vm11, %v1070_v63 }
 0x8fd   :  { %v1145_v3 = vpop.f32.mrb[24].mxu1 }
 0x8fe   :  { %v1146_v4 = vadd.f32 %v1145_v3, %v1082_v2  ;;  %v1393_v7 = vpop.f32.mrb[25].mxu1 }
 0x8ff   :  { %v1148_v8 = vpop.f32.mrb[26].mxu1 }
 0x900   :  { %v1149_v9 = vadd.f32 %v1148_v8, %v1082_v2  ;;  %v1394_v10 = vpop.f32.mrb[27].mxu1  ;;  %v1152_v5 = vadd.f32 %v1146_v4, %v990_v41  ;;  %v1190_v41 = vsub.s32 7, %v1819_v14 }
 0x902   :  { %v1154_v11 = vsel %vm131_vm1, %v1152_v5, 0.0  ;;  %v1153_v6 = vadd.f32 %v1149_v9, %v991_v42  ;;  %v1191_v43 = vrot.slane %v1828_v19, %v1190_v41 }
 0x903   :  { %1155 = vadd.xlane.f32.xlu1 %v1154_v11 }
 0x904   :  { %v1157_v12 = vsel %vm131_vm1, %v1153_v6, 0.0 }
 0x905   :  { %1158 = vadd.xlane.f32.xlu0 %v1157_v12 }
 0x990   :  { %v1156_v13 = vpop.xlane.xlu1 %1155 }
 0x991   :  { %v1160_v15 = vmul.f32 0.03125, %v1156_v13 }
 0x992   :  { %v1159_v17 = vpop.xlane.xlu0 %1158 }
 0x993   :  { %v1162_v18 = vsub.f32 %v1152_v5, %v1160_v15  ;;  %v1161_v20 = vmul.f32 0.03125, %v1159_v17 }
 0x995   :  { %v1163_v21 = vsub.f32 %v1153_v6, %v1161_v20  ;;  %v1164_v22 = vmul.f32 %v1162_v18, %v1162_v18  ;;  %v1192_v44 = vmul.f32 %v1191_v43, %v1162_v18 }
 0x997   :  { %v1166_v23 = vsel %vm131_vm1, %v1164_v22, 0.0  ;;  %v1165_v24 = vmul.f32 %v1163_v21, %v1163_v21  ;;  %v1193_v16 = vmul.f32 %v1191_v43, %v1163_v21 }
 0x998   :  { %1167 = vadd.xlane.f32.xlu1 %v1166_v23 }
 0x999   :  { %v1169_v25 = vsel %vm131_vm1, %v1165_v24, 0.0 }
 0x99a   :  { %1170 = vadd.xlane.f32.xlu0 %v1169_v25 }
 0xa25   :  { %v1168_v26 = vpop.xlane.xlu1 %1167 }
 0xa26   :  { %v1172_v27 = vmul.f32 0.032258064, %v1168_v26 }
 0xa27   :  { %v1171_v28 = vpop.xlane.xlu0 %1170 }
 0xa28   :  { %1529 = vrsqrt.f32 %v1172_v27  ;;  %v1173_v29 = vmul.f32 0.032258064, %v1171_v28  ;;  %vm1176_vm12 = vcmp.eq.f32.partialorder %v1172_v27, inf  ;;  %v1179_v32 = vand.u32 2147483648, %v1172_v27 }
 0xa29   :  { %vm1178_vm13 = vcmp.eq.f32.partialorder %v1172_v27, 0.0 }
 0xa2a   :  { %1531 = vrsqrt.f32 %v1173_v29  ;;  %vm1183_vm14 = vcmp.eq.f32.partialorder %v1173_v29, inf  ;;  %v1186_v38 = vand.u32 2147483648, %v1173_v29  ;;  %vm1185_vm15 = vcmp.eq.f32.partialorder %v1173_v29, 0.0 }
 0xa32   :  { %v1530_v30 = vpop.eup %1529 }
 0xa33   :  { %v1175_v31 = vmul.f32 %v1530_v30, %v1172_v27 }
 0xa34   :  { %v1532_v33 = vpop.eup %1531 }
 0xa35   :  { %v1177_v34 = vsel %vm1176_vm12, %v1172_v27, %v1175_v31  ;;  %v1182_v36 = vmul.f32 %v1532_v33, %v1173_v29 }
 0xa36   :  { %v1180_v35 = vsel %vm1178_vm13, %v1179_v32, %v1177_v34 }
 0xa37   :  { %v1194_v37 = vadd.f32 1e-06, %v1180_v35  ;;  %v1184_v39 = vsel %vm1183_vm14, %v1173_v29, %v1182_v36 }
 0xa38   :  { %v1187_v40 = vsel %vm1185_vm15, %v1186_v38, %v1184_v39 }
 0xa39   :  { %1533 = vrcp.f32 %v1194_v37  ;;  %v1195_v42 = vadd.f32 1e-06, %v1187_v40 }
 0xa3b   :  { %1535 = vrcp.f32 %v1195_v42 }
 0xa43   :  { %v1534_v45 = vpop.eup %1533 }
 0xa44   :  { %v1197_v47 = vmul.f32 %v1534_v45, %v1192_v44 }
 0xa45   :  { %v1536_v48 = vpop.eup %1535 }
 0xa46   :  { %v1204_v49 = vadd.f32 %v1258_v46, %v1197_v47  ;;  %v1199_v50 = vmul.f32 %v1536_v48, %v1193_v16 }
 0xa48   :  { %1206 = vst.msk [vmem:[#allocation10] sm:$0xff] %vm131_vm1, %v1204_v49  ;;  %v1205_v51 = vadd.f32 %v1258_v46, %v1199_v50 }
 0xa4a   :  { %1207 = vst.msk [vmem:[#allocation10 + $0x8] sm:$0xff] %vm131_vm1, %v1205_v51 }
 0xa4b   :  { %1636 = shalt.err (!%p1633_p8)
}
 0xa4c   :  { %s1637_s14 = scalar_lea.hbm %s1991_s8, 256 }
 0xa4d   :  { %p1638_p9 = scmp.ne.s32.totalorder %s1991_s8, %s1637_s14  ;;  %p1641_p10 = scmp.lt.u32.totalorder %s1637_s14, %s1991_s8 }
 0xa4f   :  { %p1643_p11 = pnand %p1641_p10, %p1638_p9 }
 0xa51   :  { %1646 = shalt.err (!%p1643_p11)
}
 0xa52   :  { %1219 = dma.vmem_to_hbm [thread:$0]  %s1214_s7, 256, %s1991_s8, [#allocation4], %s1659_s3, %s1659_s3, %s1660_s28  }
 0xa53   :  { %1653 = dma.done.wait [#allocation4], 256  }
 0xa54   :  { %1654 = vsyncadd [#allocation4], 4294967040 }
 0xa55   :  { %1223 = vsyncpa [#allocation3], 1 }
 0xa56   :  { %1224 = vsyncpa [#allocation6], 1 }
 0xa57   :  { %1225 = vsyncpa [#allocation9], 1 }
 0xa58   :  { %1226 = vsyncpa [#allocation4], 1 }

</bundles_post_ra>
